<compile_context>
chip_gen: v5e
topology: v5e:2x2
jax: 0.10.0
libtpu: 0.0.40
codegen_flags: <defaults>
</compile_context>

<pallas_src>
import functools

import jax
import jax.numpy as jnp
from jax import lax
from jax.experimental import pallas as pl
from jax.experimental.pallas import tpu as pltpu


# ----------------------------------------------------------------------------
# Pallas kernel: fused bilinear-2x upsample + zero-pad + 3x3 conv + leaky_relu
# ----------------------------------------------------------------------------
def _unet_cat_conv_kernel(x2_ref, uwT_ref, dext_ref, o_ref, *, N, KB, MB, W):
    # x2_ref:   (N*Cin*H2, W2)      bf16  natural (zero-copy) flatten of NCHW input_2
    # uwT_ref:  (W2, W+2)           bf16  W-direction bilinear-2x upsample + conv pad, transposed
    # dext_ref: (3*Cout*H, Cin*H2)  bf16  conv weights folded with H-upsample+pad, one slab per x-tap
    # o_ref:    (N*Cout*H, W)       f32   output_2 in flat NCHW (wrapper just reshapes)
    # KB = Cin*H2 (contraction / per-batch row block), MB = Cout*H (output row block)

    # W-direction upsample + pad for the WHOLE batch in a single MXU matmul
    # (batch folded into the M rows: M = N*Cin*H2).
    a = jnp.dot(x2_ref[...], uwT_ref[...],
                preferred_element_type=jnp.float32)            # (N*KB, W+2) f32
    a = a.astype(jnp.bfloat16)

    for n in range(N):  # batch tail: tiny static unroll (N=2); rows n*KB are sublane-aligned
        a_n = a[n * KB:(n + 1) * KB, :]                        # (KB, W+2)
        acc = jnp.zeros((MB, W), jnp.float32)
        for dx in range(3):  # 3 accumulating matmuls -- no 3x-wide concat buffer
            acc = acc + jnp.dot(dext_ref[dx * MB:(dx + 1) * MB, :],
                                a_n[:, dx:dx + W],
                                preferred_element_type=jnp.float32)
        acc = jnp.where(acc >= 0.0, acc, 0.2 * acc)            # leaky_relu(0.2)
        # one contiguous slab store per batch element (== flat NCHW of output_2)
        o_ref[n * MB:(n + 1) * MB, :] = acc.astype(o_ref.dtype)


# ----------------------------------------------------------------------------
# Glue: upsample matrices, weight folding, spectral norm, wrapper
# ----------------------------------------------------------------------------
def _bilinear_upsample_matrix(L):
    """(2L, L) matrix implementing PyTorch bilinear 2x upsample, align_corners=False."""
    t = jnp.arange(2 * L, dtype=jnp.float32)
    src = jnp.maximum((t + 0.5) / 2.0 - 0.5, 0.0)
    i0 = jnp.minimum(jnp.floor(src).astype(jnp.int32), L - 1)
    i1 = jnp.minimum(i0 + 1, L - 1)
    w1 = src - i0.astype(jnp.float32)
    w0 = 1.0 - w1
    return (w0[:, None] * jax.nn.one_hot(i0, L, dtype=jnp.float32)
            + w1[:, None] * jax.nn.one_hot(i1, L, dtype=jnp.float32))


def spectral_normalize(w_oihw, key, n_iter=1):
    """One power-iteration spectral norm (as torch.nn.utils.spectral_norm does)."""
    # TODO(synk): torch keeps a persistent power-iteration buffer `u`; here a fresh
    # vector is drawn from `key`, so sigma only matches a torch module whose buffer
    # happens to coincide.
    cout = w_oihw.shape[0]
    w_mat = w_oihw.reshape(cout, -1)
    u = jax.random.normal(key, (cout,), jnp.float32)
    u = u / (jnp.linalg.norm(u) + 1e-12)
    v = None
    for _ in range(n_iter):
        v = w_mat.T @ u
        v = v / (jnp.linalg.norm(v) + 1e-12)
        u = w_mat @ v
        u = u / (jnp.linalg.norm(u) + 1e-12)
    sigma = u @ (w_mat @ v)
    return w_oihw / sigma


@jax.jit
def unet_cat_forward(input_1_nchw, input_2_nchw, w_sn_oihw):
    """Full unetCat.forward. All tensors NCHW, matching PyTorch."""
    N, C1, H1, W1 = input_1_nchw.shape
    _, Cin, H2, W2 = input_2_nchw.shape
    Cout = w_sn_oihw.shape[0]
    H, W = 2 * H2, 2 * W2
    KB, MB = Cin * H2, Cout * H

    # ---- weight / constant prep (XLA; depends only on conv weights & static shapes) ----
    u_h = jnp.pad(_bilinear_upsample_matrix(H2), ((1, 1), (0, 0)))        # (H+2, H2)
    u_w = jnp.pad(_bilinear_upsample_matrix(W2), ((1, 1), (0, 0)))        # (W+2, W2)
    uwT = u_w.T.astype(jnp.bfloat16)                                      # (W2, W+2)
    uh_taps = jnp.stack([u_h[dy:dy + H, :] for dy in range(3)], axis=0)   # (3, H, H2)
    # dext[dx, (co,y), (ci,i)] = sum_dy w[co,ci,dy,dx] * u_h_pad[y+dy, i]
    dext = jnp.einsum('ocab,ayi->boyci', w_sn_oihw.astype(jnp.float32), uh_taps)
    dext = dext.reshape(3 * MB, KB).astype(jnp.bfloat16)                  # (3*Cout*H, Cin*H2)
    # NOTE: at realistic channel counts dext is O(Cin*Cout*H^2) -> tile it with a grid
    # axis and set vmem_limit_bytes; at this config it is 12 KiB so no tiling needed.

    # ---- zero-copy (contiguous NCHW) flatten of input_2; bf16 halves its HBM/VMEM bytes
    x2_flat = input_2_nchw.reshape(N * KB, W2).astype(jnp.bfloat16)

    kernel = functools.partial(_unet_cat_conv_kernel, N=N, KB=KB, MB=MB, W=W)
    out2_flat = pl.pallas_call(
        kernel,
        out_shape=jax.ShapeDtypeStruct((N * MB, W), jnp.float32),
        grid=(1,),  # single invocation: batch folded into matmul rows, no per-step overhead
        in_specs=[
            pl.BlockSpec((N * KB, W2), lambda i: (0, 0)),
            pl.BlockSpec((W2, W + 2), lambda i: (0, 0)),
            pl.BlockSpec((3 * MB, KB), lambda i: (0, 0)),
        ],
        out_specs=pl.BlockSpec((N * MB, W), lambda i: (0, 0)),
        compiler_params=pltpu.CompilerParams(dimension_semantics=("arbitrary",)),
    )(x2_flat, uwT, dext)

    # flat NCHW -> (N, Cout, H, W): pure reshape, no transpose.
    out2 = out2_flat.reshape(N, Cout, H, W).astype(input_1_nchw.dtype)

    # ---- skip connection: F.pad(input_1) + torch.cat are pure pass-through copies ----
    # (kept in XLA per the perf review; routing them through the kernel's vector unit
    #  would double its ld/st traffic for zero compute)
    p = (H - H1) // 2
    if p > 0:
        out1 = jnp.pad(input_1_nchw, ((0, 0), (0, 0), (p, p), (p, p)))
    elif p < 0:
        out1 = input_1_nchw[:, :, -p:H1 + p, -p:W1 + p]
    else:
        out1 = input_1_nchw
    return jnp.concatenate([out1, out2], axis=1)


# ----------------------------------------------------------------------------
# Pure-JAX f32 reference for a correctness check
# ----------------------------------------------------------------------------
def _upsample2x_bilinear_nhwc(x):
    N, Hh, Ww, C = x.shape

    def idx_w(L):
        src = jnp.maximum((jnp.arange(2 * L, dtype=jnp.float32) + 0.5) / 2.0 - 0.5, 0.0)
        i0 = jnp.minimum(jnp.floor(src).astype(jnp.int32), L - 1)
        i1 = jnp.minimum(i0 + 1, L - 1)
        w1 = src - i0.astype(jnp.float32)
        return i0, i1, 1.0 - w1, w1

    i0, i1, a0, a1 = idx_w(Hh)
    x = x[:, i0] * a0[None, :, None, None] + x[:, i1] * a1[None, :, None, None]
    j0, j1, b0, b1 = idx_w(Ww)
    x = x[:, :, j0] * b0[None, None, :, None] + x[:, :, j1] * b1[None, None, :, None]
    return x


def unet_cat_reference(input_1_nchw, input_2_nchw, w_sn_oihw):
    x1 = jnp.transpose(input_1_nchw, (0, 2, 3, 1))
    x2 = jnp.transpose(input_2_nchw, (0, 2, 3, 1))
    x2_up = _upsample2x_bilinear_nhwc(x2)
    w_hwio = jnp.transpose(w_sn_oihw, (2, 3, 1, 0))
    out2 = lax.conv_general_dilated(
        x2_up, w_hwio, window_strides=(1, 1), padding="SAME",
        dimension_numbers=("NHWC", "HWIO", "NHWC"))
    out2 = jnp.where(out2 >= 0.0, out2, 0.2 * out2)
    p = (out2.shape[1] - x1.shape[1]) // 2
    out1 = jnp.pad(x1, ((0, 0), (p, p), (p, p), (0, 0)))
    y = jnp.concatenate([out1, out2], axis=-1)
    return jnp.transpose(y, (0, 3, 1, 2))


if __name__ == "__main__":
    key = jax.random.PRNGKey(0)
    k_x1, k_x2, k_w, k_u = jax.random.split(key, 4)

    # Module config: unetCat(dim_in=4, dim_out=4)
    dim_in, dim_out = 4, 4
    N, H1, W1 = 2, 16, 16

    # input_1: skip connection (N, C1, H, W); input_2: lower-res feature map.
    input_1 = jax.random.normal(k_x1, (N, 4, H1, W1), jnp.float32)
    input_2 = jax.random.normal(k_x2, (N, dim_in, H1 // 2, W1 // 2), jnp.float32)

    # Conv weight (Cout, Cin, 3, 3), bias=False per the module, then spectral norm.
    w = 0.1 * jax.random.normal(k_w, (dim_out, dim_in, 3, 3), jnp.float32)
    w_sn = spectral_normalize(w, k_u, n_iter=1)

    y = unet_cat_forward(input_1, input_2, w_sn)
    jax.block_until_ready(y)

    y_ref = unet_cat_reference(input_1, input_2, w_sn)
    assert y.shape == (N, 4 + dim_out, H1, W1), y.shape
    # Tolerance covers bf16 MXU-operand rounding (~1e-2 abs worst case vs f32 reference).
    assert jnp.allclose(y, y_ref, atol=3e-2, rtol=3e-2), "mismatch vs reference"

    print("KERNEL_OK")
</pallas_src>

<mosaic_0001>
module attributes {stable_mosaic.version = 11 : i64} {
  func.func @_unet_cat_conv_kernel(%arg0: i32, %arg1: memref<64x8xbf16, #tpu.memory_space<vmem>>, %arg2: memref<8x18xbf16, #tpu.memory_space<vmem>>, %arg3: memref<192x32xbf16, #tpu.memory_space<vmem>>, %arg4: memref<128x16xf32, #tpu.memory_space<vmem>>) attributes {dimension_semantics = [#tpu.dimension_semantics<arbitrary>], iteration_bounds = array<i64: 1>, scalar_prefetch = 0 : i64, scratch_operands = 0 : i64, tpu.core_type = #tpu.core_type<tc>, window_params = [{pipeline_mode = #tpu.pipeline_mode<synchronous>, transform_indices = @transform_0, window_bounds = array<i64: 64, 8>}, {pipeline_mode = #tpu.pipeline_mode<synchronous>, transform_indices = @transform_1, window_bounds = array<i64: 8, 18>}, {pipeline_mode = #tpu.pipeline_mode<synchronous>, transform_indices = @transform_2, window_bounds = array<i64: 192, 32>}, {pipeline_mode = #tpu.pipeline_mode<synchronous>, transform_indices = @transform_3, window_bounds = array<i64: 128, 16>}]} {
    %c0 = arith.constant 0 : index
    %c0_0 = arith.constant 0 : index
    %0 = vector.load %arg1[%c0, %c0_0] : memref<64x8xbf16, #tpu.memory_space<vmem>>, vector<64x8xbf16>
    %c0_1 = arith.constant 0 : index
    %c0_2 = arith.constant 0 : index
    %1 = vector.load %arg2[%c0_1, %c0_2] : memref<8x18xbf16, #tpu.memory_space<vmem>>, vector<8x18xbf16>
    %cst = arith.constant dense<0.000000e+00> : vector<64x18xf32>
    %2 = tpu.matmul %0, %1, %cst {dimension_numbers = #tpu.dot_dimension_numbers<[1], [0], [0], [1], [0, 0, 1, 1], [], []>} : vector<64x8xbf16>, vector<8x18xbf16>, vector<64x18xf32> -> vector<64x18xf32>
    %3 = arith.truncf %2 : vector<64x18xf32> to vector<64x18xbf16>
    %4 = vector.extract_strided_slice %3 {offsets = [0, 0], sizes = [32, 18], strides = [1, 1]} : vector<64x18xbf16> to vector<32x18xbf16>
    %cst_3 = arith.constant 0.000000e+00 : f32
    %5 = vector.broadcast %cst_3 : f32 to vector<64x16xf32>
    %c0_4 = arith.constant 0 : index
    %c0_5 = arith.constant 0 : index
    %6 = vector.load %arg3[%c0_4, %c0_5] : memref<192x32xbf16, #tpu.memory_space<vmem>>, vector<64x32xbf16>
    %7 = vector.extract_strided_slice %4 {offsets = [0, 0], sizes = [32, 16], strides = [1, 1]} : vector<32x18xbf16> to vector<32x16xbf16>
    %cst_6 = arith.constant dense<0.000000e+00> : vector<64x16xf32>
    %8 = tpu.matmul %6, %7, %cst_6 {dimension_numbers = #tpu.dot_dimension_numbers<[1], [0], [0], [1], [0, 0, 1, 1], [], []>} : vector<64x32xbf16>, vector<32x16xbf16>, vector<64x16xf32> -> vector<64x16xf32>
    %9 = arith.addf %5, %8 : vector<64x16xf32>
    %c64 = arith.constant 64 : index
    %c0_7 = arith.constant 0 : index
    %10 = vector.load %arg3[%c64, %c0_7] : memref<192x32xbf16, #tpu.memory_space<vmem>>, vector<64x32xbf16>
    %11 = vector.extract_strided_slice %4 {offsets = [0, 1], sizes = [32, 16], strides = [1, 1]} : vector<32x18xbf16> to vector<32x16xbf16>
    %cst_8 = arith.constant dense<0.000000e+00> : vector<64x16xf32>
    %12 = tpu.matmul %10, %11, %cst_8 {dimension_numbers = #tpu.dot_dimension_numbers<[1], [0], [0], [1], [0, 0, 1, 1], [], []>} : vector<64x32xbf16>, vector<32x16xbf16>, vector<64x16xf32> -> vector<64x16xf32>
    %13 = arith.addf %9, %12 : vector<64x16xf32>
    %c128 = arith.constant 128 : index
    %c0_9 = arith.constant 0 : index
    %14 = vector.load %arg3[%c128, %c0_9] : memref<192x32xbf16, #tpu.memory_space<vmem>>, vector<64x32xbf16>
    %15 = vector.extract_strided_slice %4 {offsets = [0, 2], sizes = [32, 16], strides = [1, 1]} : vector<32x18xbf16> to vector<32x16xbf16>
    %cst_10 = arith.constant dense<0.000000e+00> : vector<64x16xf32>
    %16 = tpu.matmul %14, %15, %cst_10 {dimension_numbers = #tpu.dot_dimension_numbers<[1], [0], [0], [1], [0, 0, 1, 1], [], []>} : vector<64x32xbf16>, vector<32x16xbf16>, vector<64x16xf32> -> vector<64x16xf32>
    %17 = arith.addf %13, %16 : vector<64x16xf32>
    %cst_11 = arith.constant 0.000000e+00 : f32
    %18 = vector.broadcast %cst_11 : f32 to vector<64x16xf32>
    %19 = arith.cmpf oge, %17, %18 : vector<64x16xf32>
    %cst_12 = arith.constant 2.000000e-01 : f32
    %20 = vector.broadcast %cst_12 : f32 to vector<64x16xf32>
    %21 = arith.mulf %20, %17 : vector<64x16xf32>
    %22 = arith.select %19, %17, %21 : vector<64x16xi1>, vector<64x16xf32>
    %c0_13 = arith.constant 0 : index
    %c0_14 = arith.constant 0 : index
    %23 = vector.load %arg4[%c0_13, %c0_14] : memref<128x16xf32, #tpu.memory_space<vmem>>, vector<64x16xf32>
    tpu.vector_store %arg4[%c0_13, %c0_14], %22 {strides = array<i32>} : memref<128x16xf32, #tpu.memory_space<vmem>>, vector<64x16xf32>,
    %24 = vector.extract_strided_slice %3 {offsets = [32, 0], sizes = [32, 18], strides = [1, 1]} : vector<64x18xbf16> to vector<32x18xbf16>
    %cst_15 = arith.constant 0.000000e+00 : f32
    %25 = vector.broadcast %cst_15 : f32 to vector<64x16xf32>
    %c0_16 = arith.constant 0 : index
    %c0_17 = arith.constant 0 : index
    %26 = vector.load %arg3[%c0_16, %c0_17] : memref<192x32xbf16, #tpu.memory_space<vmem>>, vector<64x32xbf16>
    %27 = vector.extract_strided_slice %24 {offsets = [0, 0], sizes = [32, 16], strides = [1, 1]} : vector<32x18xbf16> to vector<32x16xbf16>
    %cst_18 = arith.constant dense<0.000000e+00> : vector<64x16xf32>
    %28 = tpu.matmul %26, %27, %cst_18 {dimension_numbers = #tpu.dot_dimension_numbers<[1], [0], [0], [1], [0, 0, 1, 1], [], []>} : vector<64x32xbf16>, vector<32x16xbf16>, vector<64x16xf32> -> vector<64x16xf32>
    %29 = arith.addf %25, %28 : vector<64x16xf32>
    %c64_19 = arith.constant 64 : index
    %c0_20 = arith.constant 0 : index
    %30 = vector.load %arg3[%c64_19, %c0_20] : memref<192x32xbf16, #tpu.memory_space<vmem>>, vector<64x32xbf16>
    %31 = vector.extract_strided_slice %24 {offsets = [0, 1], sizes = [32, 16], strides = [1, 1]} : vector<32x18xbf16> to vector<32x16xbf16>
    %cst_21 = arith.constant dense<0.000000e+00> : vector<64x16xf32>
    %32 = tpu.matmul %30, %31, %cst_21 {dimension_numbers = #tpu.dot_dimension_numbers<[1], [0], [0], [1], [0, 0, 1, 1], [], []>} : vector<64x32xbf16>, vector<32x16xbf16>, vector<64x16xf32> -> vector<64x16xf32>
    %33 = arith.addf %29, %32 : vector<64x16xf32>
    %c128_22 = arith.constant 128 : index
    %c0_23 = arith.constant 0 : index
    %34 = vector.load %arg3[%c128_22, %c0_23] : memref<192x32xbf16, #tpu.memory_space<vmem>>, vector<64x32xbf16>
    %35 = vector.extract_strided_slice %24 {offsets = [0, 2], sizes = [32, 16], strides = [1, 1]} : vector<32x18xbf16> to vector<32x16xbf16>
    %cst_24 = arith.constant dense<0.000000e+00> : vector<64x16xf32>
    %36 = tpu.matmul %34, %35, %cst_24 {dimension_numbers = #tpu.dot_dimension_numbers<[1], [0], [0], [1], [0, 0, 1, 1], [], []>} : vector<64x32xbf16>, vector<32x16xbf16>, vector<64x16xf32> -> vector<64x16xf32>
    %37 = arith.addf %33, %36 : vector<64x16xf32>
    %cst_25 = arith.constant 0.000000e+00 : f32
    %38 = vector.broadcast %cst_25 : f32 to vector<64x16xf32>
    %39 = arith.cmpf oge, %37, %38 : vector<64x16xf32>
    %cst_26 = arith.constant 2.000000e-01 : f32
    %40 = vector.broadcast %cst_26 : f32 to vector<64x16xf32>
    %41 = arith.mulf %40, %37 : vector<64x16xf32>
    %42 = arith.select %39, %37, %41 : vector<64x16xi1>, vector<64x16xf32>
    %c64_27 = arith.constant 64 : index
    %c0_28 = arith.constant 0 : index
    %43 = vector.load %arg4[%c64_27, %c0_28] : memref<128x16xf32, #tpu.memory_space<vmem>>, vector<64x16xf32>
    tpu.vector_store %arg4[%c64_27, %c0_28], %42 {strides = array<i32>} : memref<128x16xf32, #tpu.memory_space<vmem>>, vector<64x16xf32>,
    return
  }
  func.func @transform_0(%arg0: i32) -> (i32, i32) {
    %c0_i32 = arith.constant 0 : i32
    %c0_i32_0 = arith.constant 0 : i32
    %c0_i32_1 = arith.constant 0 : i32
    return %c0_i32, %c0_i32_0 : i32, i32
  }
  func.func @transform_1(%arg0: i32) -> (i32, i32) {
    %c0_i32 = arith.constant 0 : i32
    %c0_i32_0 = arith.constant 0 : i32
    %c0_i32_1 = arith.constant 0 : i32
    return %c0_i32, %c0_i32_0 : i32, i32
  }
  func.func @transform_2(%arg0: i32) -> (i32, i32) {
    %c0_i32 = arith.constant 0 : i32
    %c0_i32_0 = arith.constant 0 : i32
    %c0_i32_1 = arith.constant 0 : i32
    return %c0_i32, %c0_i32_0 : i32, i32
  }
  func.func @transform_3(%arg0: i32) -> (i32, i32) {
    %c0_i32 = arith.constant 0 : i32
    %c0_i32_0 = arith.constant 0 : i32
    %c0_i32_1 = arith.constant 0 : i32
    return %c0_i32, %c0_i32_0 : i32, i32
  }
}

</mosaic_0001>

<bundles_post_ra>
// kernel: unet_cat_forward.1
= control target key start
LH: loop header
LB: loop body
LE: loop exit
PB: predicated region body
PF: predicated region fallthrough
CT: control target
= control target key end

     0   :  { %vm57_vm0 = vcmask 1043456   ;;  %vm44_vm1 = vcmask 64512   ;;  %s820_s21 = smov 126   ;;  %vm150_vm2 = vcmask 261120   ;;  %vm362_vm3 = vcmask 130048   ;;  %s1057_s1 = inlined_call_operand.vmem [shape: bf16[8,18], index: 1, kind: input, shape index: {}]   ;;  %s1058_s0 = inlined_call_operand.vmem [shape: bf16[64,8], index: 0, kind: input, shape index: {}]   ;;  %s1059_s2 = inlined_call_operand.vmem [shape: bf16[192,32], index: 2, kind: input, shape index: {}]   ;;  %s1060_s3 = inlined_call_operand.vmem [shape: f32[128,16], index: 3, kind: output, shape index: {}]  }
   0x1   :  { %v23_v0 = vld [vmem:[%s1057_s1] sm:$0xf]  ;;  %v787_v3 = vld [vmem:[%s1058_s0 + $0x8] sm:$0xff]  ;;  %v788_v4 = vld [vmem:[%s1058_s0 + $0x10] sm:$0xff] }
   0x2   :  { %v59_v1 = vsel %vm57_vm0, %v23_v0, 0  ;;  %v786_v2 = vld [vmem:[%s1058_s0] sm:$0xff]  ;;  %v789_v5 = vld [vmem:[%s1058_s0 + $0x18] sm:$0xff]  ;;  %s821_s0 = smov 127   ;;  %v791_v34 = vld [vmem:[%s1059_s2 + $0x8] sm:$0xff] }
   0x3   :  { %68 = vmatpush.bf16.msra.mxu0 %v59_v1  ;;  %v792_v35 = vld [vmem:[%s1059_s2 + $0x10] sm:$0xff]  ;;  %v793_v38 = vld [vmem:[%s1059_s2 + $0x18] sm:$0xff]  ;;  %v795_v41 = vld [vmem:[%s1059_s2 + $0x28] sm:$0xff] }
   0x4   :  { %v794_v42 = vld [vmem:[%s1059_s2 + $0x20] sm:$0xff]  ;;  %v796_v44 = vld [vmem:[%s1059_s2 + $0x30] sm:$0xff]  ;;  %v797_v50 = vld [vmem:[%s1059_s2 + $0x38] sm:$0xff] }
   0x5   :  { %v790_v45 = vld [vmem:[%s1059_s2] sm:$0xff]  ;;  %v811_v53 = vld [vmem:[%s1059_s2 + $0x48] sm:$0xff]  ;;  %v812_v57 = vld [vmem:[%s1059_s2 + $0x50] sm:$0xff] }
   0x6   :  { %662 = vmatmul.msk.bf16.vlgmr.msra.gmra.mxu0 %vm44_vm1, %v786_v2  ;;  %v810_v48 = vld [vmem:[%s1059_s2 + $0x40] sm:$0xff]  ;;  %v807_v55 = vld [vmem:[%s1059_s2 + $0x28] sm:$0xff]  ;;  %v808_v59 = vld [vmem:[%s1059_s2 + $0x30] sm:$0xff] }
   0x7   :  { %v806_v51 = vld [vmem:[%s1059_s2 + $0x20] sm:$0xff]  ;;  %v803_v56 = vld [vmem:[%s1059_s2 + $0x8] sm:$0xff]  ;;  %v804_v60 = vld [vmem:[%s1059_s2 + $0x10] sm:$0xff] }
   0x8   :  { %v802_v52 = vld [vmem:[%s1059_s2] sm:$0xff]  ;;  %v799_v58 = vld [vmem:[%s1059_s2 + $0x48] sm:$0xff]  ;;  %v813_v61 = vld [vmem:[%s1059_s2 + $0x58] sm:$0xff] }
   0x9   :  { %v798_v54 = vld [vmem:[%s1059_s2 + $0x40] sm:$0xff]  ;;  %v800_v62 = vld [vmem:[%s1059_s2 + $0x50] sm:$0xff]  ;;  %v809_v63 = vld [vmem:[%s1059_s2 + $0x38] sm:$0xff] }
   0xa   :  { %v805_v0 = vld [vmem:[%s1059_s2 + $0x18] sm:$0xff] }
   0xb   :  { %v801_v1 = vld [vmem:[%s1059_s2 + $0x58] sm:$0xff] }
  0x16   :  { %663 = vmatmul.msk.bf16.gmra.mxu0 %vm44_vm1, %v787_v3 }
  0x26   :  { %664 = vmatmul.msk.bf16.gmra.mxu0 %vm44_vm1, %v788_v4 }
  0x36   :  { %665 = vmatmul.msk.bf16.gmra.mxu0 %vm44_vm1, %v789_v5 }
  0x83   :  { %v70_v6 = vpop.f32.mrf.mxu0 }
  0x84   :  { %v90_v7 = vpack.c.bf16 %v70_v6, %v70_v6 }
  0x86   :  { %v138_v10 = vunpack.c.l.b16 %v90_v7 }
  0x8b   :  { %v72_v8 = vpop.f32.mrf.mxu0 }
  0x8c   :  { %v91_v9 = vpack.c.bf16 %v72_v8, %v72_v8 }
  0x8e   :  { %v139_v11 = vunpack.c.l.b16 %v91_v9 }
  0x90   :  { %v142_v12 = vpack.c.b16 %v139_v11, %v138_v10 }
  0x92   :  { %283 = vrot.lane.b32.xlu2 %v142_v12, %s820_s21 }
  0x93   :  { %v75_v13 = vpop.f32.mrf.mxu0 }
  0x94   :  { %v92_v14 = vpack.c.bf16 %v75_v13, %v75_v13 }
  0x96   :  { %v140_v17 = vunpack.c.l.b16 %v92_v14 }
  0x9b   :  { %v77_v15 = vpop.f32.mrf.mxu0 }
  0x9c   :  { %v93_v16 = vpack.c.bf16 %v77_v15, %v77_v15 }
  0x9e   :  { %v141_v18 = vunpack.c.l.b16 %v93_v16 }
  0xa0   :  { %v143_v19 = vpack.c.b16 %v141_v18, %v140_v17 }
  0xa2   :  { %285 = vrot.lane.b32.xlu1 %v143_v19, %s820_s21  ;;  %146 = vrot.lane.b32.xlu0 %v143_v19, %s821_s0 }
  0xa3   :  { %816 = vmatpush.bf16.msra.mxu2 %v143_v19  ;;  %v80_v20 = vpop.f32.mrf.mxu0 }
  0xa4   :  { %v94_v21 = vpack.c.bf16 %v80_v20, %v80_v20 }
  0xa6   :  { %v411_v23 = vunpack.c.l.b16 %v94_v21 }
  0xa7   :  { %817 = vmatpush.bf16.msra.mxu2 %v142_v12 }
  0xaa   :  { %144 = vrot.lane.b32.xlu0 %v142_v12, %s821_s0  ;;  %703 = vmatmul.msk.bf16.vlgmr.msra.gmra.mxu2 %vm150_vm2, %v791_v34 }
  0xab   :  { %v82_v22 = vpop.f32.mrf.mxu0 }
  0xac   :  { %v95_v24 = vpack.c.bf16 %v82_v22, %v82_v22 }
  0xae   :  { %v412_v25 = vunpack.c.l.b16 %v95_v24 }
  0xb0   :  { %v415_v26 = vpack.c.b16 %v412_v25, %v411_v23 }
  0xb2   :  { %555 = vrot.lane.b32.xlu0 %v415_v26, %s820_s21 }
  0xb3   :  { %v85_v27 = vpop.f32.mrf.mxu0 }
  0xb4   :  { %v96_v28 = vpack.c.bf16 %v85_v27, %v85_v27 }
  0xb6   :  { %v413_v30 = vunpack.c.l.b16 %v96_v28 }
  0xba   :  { %704 = vmatmul.msk.bf16.gmra.mxu2 %vm150_vm2, %v792_v35 }
  0xbb   :  { %v87_v29 = vpop.f32.mrf.mxu0 }
  0xbc   :  { %v97_v31 = vpack.c.bf16 %v87_v29, %v87_v29 }
  0xbe   :  { %v414_v32 = vunpack.c.l.b16 %v97_v31 }
  0xc0   :  { %v416_v33 = vpack.c.b16 %v414_v32, %v413_v30 }
  0xc2   :  { %419 = vrot.lane.b32.xlu2 %v416_v33, %s821_s0  ;;  %557 = vrot.lane.b32.xlu1 %v416_v33, %s820_s21 }
  0xca   :  { %417 = vrot.lane.b32.xlu1 %v415_v26, %s821_s0  ;;  %705 = vmatmul.msk.bf16.gmra.mxu2 %vm150_vm2, %v793_v38 }
  0xec   :  { %v284_v36 = vpop.permute.xlu2 %283 }
 0x114   :  { %v147_v37 = vpop.permute.xlu0 %146  ;;  %v286_v43 = vpop.permute.xlu1 %285 }
 0x115   :  { %169 = vmatpush.bf16.msra.mxu1 %v147_v37  ;;  %814 = vmatpush.bf16.msra.mxu3 %v147_v37 }
 0x11c   :  { %v145_v39 = vpop.permute.xlu0 %144  ;;  %v420_v40 = vpop.permute.xlu2 %419 }
 0x11d   :  { %170 = vmatpush.bf16.msra.mxu1 %v145_v39  ;;  %815 = vmatpush.bf16.msra.mxu3 %v145_v39 }
 0x11e   :  { %441 = vmatpush.bf16.msrb.mxu0 %v420_v40 }
 0x120   :  { %683 = vmatmul.msk.bf16.vlgmr.msra.gmra.mxu3 %vm150_vm2, %v795_v41  ;;  %682 = vmatmul.msk.bf16.vlgmr.msra.gmra.mxu1 %vm150_vm2, %v794_v42 }
 0x121   :  { %232 = vmatpush.bf16.msrb.mxu1 %v143_v19  ;;  %307 = vmatpush.bf16.msrb.mxu3 %v286_v43 }
 0x124   :  { %v556_v47 = vpop.permute.xlu0 %555 }
 0x125   :  { %233 = vmatpush.bf16.msrb.mxu1 %v142_v12  ;;  %308 = vmatpush.bf16.msrb.mxu3 %v284_v36 }
 0x129   :  { %504 = vmatpush.bf16.msra.mxu1 %v416_v33 }
 0x12d   :  { %505 = vmatpush.bf16.msra.mxu1 %v415_v26  ;;  %v957_v2 = vpop.f32.mrf.mxu2 }
 0x130   :  { %684 = vmatmul.msk.bf16.gmra.mxu3 %vm150_vm2, %v796_v44  ;;  %702 = vmatmul.msk.bf16.vlgmr.msrb.gmra.mxu1 %vm150_vm2, %v790_v45 }
 0x134   :  { %v558_v46 = vpop.permute.xlu1 %557 }
 0x135   :  { %579 = vmatpush.bf16.msrb.mxu2 %v558_v46  ;;  %v959_v3 = vpop.f32.mrf.mxu2 }
 0x139   :  { %580 = vmatpush.bf16.msrb.mxu2 %v556_v47 }
 0x13c   :  { %v418_v49 = vpop.permute.xlu1 %417  ;;  %782 = vmatmul.msk.bf16.vlgmr.msrb.gmra.mxu2 %vm150_vm2, %v810_v48 }
 0x13d   :  { %442 = vmatpush.bf16.msrb.mxu0 %v418_v49  ;;  %v961_v4 = vpop.f32.mrf.mxu2 }
 0x140   :  { %685 = vmatmul.msk.bf16.gmra.mxu3 %vm150_vm2, %v797_v50  ;;  %742 = vmatmul.msk.bf16.vlgmr.msrb.gmra.mxu0 %vm150_vm2, %v806_v51 }
 0x141   :  { %762 = vmatmul.msk.bf16.vlgmr.msra.gmra.mxu1 %vm150_vm2, %v802_v52 }
 0x145   :  { %v963_v6 = vpop.f32.mrf.mxu2 }
 0x14c   :  { %783 = vmatmul.msk.bf16.gmra.mxu2 %vm150_vm2, %v811_v53 }
 0x14d   :  { %v969_v10 = vpop.f32.mrf.mxu2 }
 0x150   :  { %722 = vmatmul.msk.bf16.vlgmr.msrb.gmra.mxu3 %vm150_vm2, %v798_v54  ;;  %743 = vmatmul.msk.bf16.gmra.mxu0 %vm150_vm2, %v807_v55 }
 0x151   :  { %763 = vmatmul.msk.bf16.gmra.mxu1 %vm150_vm2, %v803_v56 }
 0x155   :  { %v973_v13 = vpop.f32.mrf.mxu2 }
 0x15c   :  { %784 = vmatmul.msk.bf16.gmra.mxu2 %vm150_vm2, %v812_v57 }
 0x160   :  { %723 = vmatmul.msk.bf16.gmra.mxu3 %vm150_vm2, %v799_v58  ;;  %744 = vmatmul.msk.bf16.gmra.mxu0 %vm150_vm2, %v808_v59 }
 0x161   :  { %764 = vmatmul.msk.bf16.gmra.mxu1 %vm150_vm2, %v804_v60 }
 0x16c   :  { %785 = vmatmul.msk.bf16.gmra.mxu2 %vm150_vm2, %v813_v61 }
 0x170   :  { %724 = vmatmul.msk.bf16.gmra.mxu3 %vm150_vm2, %v800_v62  ;;  %745 = vmatmul.msk.bf16.gmra.mxu0 %vm150_vm2, %v809_v63 }
 0x171   :  { %765 = vmatmul.msk.bf16.gmra.mxu1 %vm150_vm2, %v805_v0 }
 0x180   :  { %725 = vmatmul.msk.bf16.gmra.mxu3 %vm150_vm2, %v801_v1 }
 0x19d   :  { %v172_v5 = vpop.f32.mrf.mxu1 }
 0x1a3   :  { %v965_v7 = vpop.f32.mrf.mxu3 }
 0x1a4   :  { %v241_v61 = vadd.f32 %v957_v2, %v965_v7 }
 0x1a5   :  { %v174_v8 = vpop.f32.mrf.mxu1 }
 0x1ab   :  { %v967_v9 = vpop.f32.mrf.mxu3 }
 0x1ac   :  { %v243_v7 = vadd.f32 %v959_v3, %v967_v9 }
 0x1ad   :  { %v235_v11 = vpop.f32.mrf.mxu1 }
 0x1ae   :  { %v236_v37 = vadd.f32 %v235_v11, %v172_v5 }
 0x1b3   :  { %v971_v12 = vpop.f32.mrf.mxu3 }
 0x1b4   :  { %v246_v9 = vadd.f32 %v961_v4, %v971_v12 }
 0x1b5   :  { %v237_v14 = vpop.f32.mrf.mxu1 }
 0x1b6   :  { %v238_v49 = vadd.f32 %v237_v14, %v174_v8 }
 0x1bb   :  { %v975_v15 = vpop.f32.mrf.mxu3 }
 0x1bc   :  { %v248_v12 = vadd.f32 %v963_v6, %v975_v15 }
 0x1bd   :  { %v444_v16 = vpop.f32.mrf.mxu0 }
 0x1be   :  { %v507_v17 = vpop.f32.mrf.mxu1 }
 0x1bf   :  { %v508_v18 = vadd.f32 %v507_v17, %v444_v16  ;;  %v582_v19 = vpop.f32.mrf.mxu2 }
 0x1c1   :  { %v602_v20 = vadd.f32 %v582_v19, %v508_v18 }
 0x1c3   :  { %v977_v21 = vpop.f32.mrf.mxu3  ;;  %vm610_vm4 = vcmp.ge.f32.partialorder %v602_v20, 0.0  ;;  %v618_v22 = vmul.f32 0.2, %v602_v20 }
 0x1c4   :  { %v251_v6 = vadd.f32 %v969_v10, %v977_v21 }
 0x1c5   :  { %v626_v23 = vsel %vm610_vm4, %v602_v20, %v618_v22  ;;  %v446_v24 = vpop.f32.mrf.mxu0 }
 0x1c6   :  { %634 = vst.msk [vmem:[%s1060_s3 + $0x40] sm:$0xff] %vm362_vm3, %v626_v23  ;;  %v509_v25 = vpop.f32.mrf.mxu1 }
 0x1c7   :  { %v510_v26 = vadd.f32 %v509_v25, %v446_v24  ;;  %v584_v27 = vpop.f32.mrf.mxu2 }
 0x1c9   :  { %v603_v28 = vadd.f32 %v584_v27, %v510_v26 }
 0x1cb   :  { %v983_v29 = vpop.f32.mrf.mxu3  ;;  %vm611_vm5 = vcmp.ge.f32.partialorder %v603_v28, 0.0  ;;  %v619_v30 = vmul.f32 0.2, %v603_v28 }
 0x1cd   :  { %v627_v31 = vsel %vm611_vm5, %v603_v28, %v619_v30  ;;  %v449_v32 = vpop.f32.mrf.mxu0 }
 0x1ce   :  { %635 = vst.msk [vmem:[%s1060_s3 + $0x48] sm:$0xff] %vm362_vm3, %v627_v31  ;;  %v512_v33 = vpop.f32.mrf.mxu1 }
 0x1cf   :  { %v513_v34 = vadd.f32 %v512_v33, %v449_v32  ;;  %v587_v35 = vpop.f32.mrf.mxu2 }
 0x1d1   :  { %v604_v36 = vadd.f32 %v587_v35, %v513_v34 }
 0x1d3   :  { %v310_v38 = vpop.f32.mrf.mxu3  ;;  %vm612_vm6 = vcmp.ge.f32.partialorder %v604_v36, 0.0  ;;  %v620_v39 = vmul.f32 0.2, %v604_v36 }
 0x1d4   :  { %v330_v40 = vadd.f32 %v310_v38, %v236_v37 }
 0x1d5   :  { %v628_v41 = vsel %vm612_vm6, %v604_v36, %v620_v39  ;;  %v451_v42 = vpop.f32.mrf.mxu0 }
 0x1d6   :  { %vm338_vm7 = vcmp.ge.f32.partialorder %v330_v40, 0.0  ;;  %v346_v43 = vmul.f32 0.2, %v330_v40  ;;  %636 = vst.msk [vmem:[%s1060_s3 + $0x50] sm:$0xff] %vm362_vm3, %v628_v41  ;;  %v514_v44 = vpop.f32.mrf.mxu1 }
 0x1d7   :  { %v515_v45 = vadd.f32 %v514_v44, %v451_v42  ;;  %v589_v46 = vpop.f32.mrf.mxu2 }
 0x1d8   :  { %v354_v47 = vsel %vm338_vm7, %v330_v40, %v346_v43 }
 0x1d9   :  { %363 = vst.msk [vmem:[%s1060_s3] sm:$0xff] %vm362_vm3, %v354_v47  ;;  %v605_v48 = vadd.f32 %v589_v46, %v515_v45 }
 0x1db   :  { %v312_v50 = vpop.f32.mrf.mxu3  ;;  %vm613_vm8 = vcmp.ge.f32.partialorder %v605_v48, 0.0  ;;  %v621_v51 = vmul.f32 0.2, %v605_v48 }
 0x1dc   :  { %v331_v52 = vadd.f32 %v312_v50, %v238_v49  ;;  %v253_v49 = vadd.f32 %v973_v13, %v983_v29 }
 0x1dd   :  { %v629_v53 = vsel %vm613_vm8, %v605_v48, %v621_v51  ;;  %v454_v54 = vpop.f32.mrf.mxu0 }
 0x1de   :  { %vm339_vm9 = vcmp.ge.f32.partialorder %v331_v52, 0.0  ;;  %v347_v55 = vmul.f32 0.2, %v331_v52  ;;  %637 = vst.msk [vmem:[%s1060_s3 + $0x58] sm:$0xff] %vm362_vm3, %v629_v53  ;;  %v517_v56 = vpop.f32.mrf.mxu1 }
 0x1df   :  { %v518_v57 = vadd.f32 %v517_v56, %v454_v54  ;;  %v592_v58 = vpop.f32.mrf.mxu2 }
 0x1e0   :  { %v355_v59 = vsel %vm339_vm9, %v331_v52, %v347_v55 }
 0x1e1   :  { %364 = vst.msk [vmem:[%s1060_s3 + $0x8] sm:$0xff] %vm362_vm3, %v355_v59  ;;  %v606_v60 = vadd.f32 %v592_v58, %v518_v57 }
 0x1e3   :  { %v315_v62 = vpop.f32.mrf.mxu3  ;;  %vm614_vm10 = vcmp.ge.f32.partialorder %v606_v60, 0.0  ;;  %v622_v63 = vmul.f32 0.2, %v606_v60 }
 0x1e4   :  { %v332_v0 = vadd.f32 %v315_v62, %v241_v61 }
 0x1e5   :  { %v630_v1 = vsel %vm614_vm10, %v606_v60, %v622_v63  ;;  %v456_v5 = vpop.f32.mrf.mxu0 }
 0x1e6   :  { %vm340_vm11 = vcmp.ge.f32.partialorder %v332_v0, 0.0  ;;  %v348_v8 = vmul.f32 0.2, %v332_v0  ;;  %638 = vst.msk [vmem:[%s1060_s3 + $0x60] sm:$0xff] %vm362_vm3, %v630_v1  ;;  %v519_v11 = vpop.f32.mrf.mxu1 }
 0x1e7   :  { %v520_v14 = vadd.f32 %v519_v11, %v456_v5  ;;  %v594_v16 = vpop.f32.mrf.mxu2 }
 0x1e8   :  { %v356_v17 = vsel %vm340_vm11, %v332_v0, %v348_v8 }
 0x1e9   :  { %365 = vst.msk [vmem:[%s1060_s3 + $0x10] sm:$0xff] %vm362_vm3, %v356_v17  ;;  %v607_v2 = vadd.f32 %v594_v16, %v520_v14 }
 0x1eb   :  { %v317_v18 = vpop.f32.mrf.mxu3  ;;  %vm615_vm12 = vcmp.ge.f32.partialorder %v607_v2, 0.0  ;;  %v623_v19 = vmul.f32 0.2, %v607_v2 }
 0x1ec   :  { %v333_v20 = vadd.f32 %v317_v18, %v243_v7 }
 0x1ed   :  { %v631_v22 = vsel %vm615_vm12, %v607_v2, %v623_v19  ;;  %v459_v23 = vpop.f32.mrf.mxu0 }
 0x1ee   :  { %vm341_vm13 = vcmp.ge.f32.partialorder %v333_v20, 0.0  ;;  %v349_v24 = vmul.f32 0.2, %v333_v20  ;;  %639 = vst.msk [vmem:[%s1060_s3 + $0x68] sm:$0xff] %vm362_vm3, %v631_v22  ;;  %v522_v25 = vpop.f32.mrf.mxu1 }
 0x1ef   :  { %v523_v26 = vadd.f32 %v522_v25, %v459_v23  ;;  %v597_v27 = vpop.f32.mrf.mxu2 }
 0x1f0   :  { %v357_v28 = vsel %vm341_vm13, %v333_v20, %v349_v24 }
 0x1f1   :  { %366 = vst.msk [vmem:[%s1060_s3 + $0x18] sm:$0xff] %vm362_vm3, %v357_v28  ;;  %v608_v3 = vadd.f32 %v597_v27, %v523_v26 }
 0x1f3   :  { %v320_v30 = vpop.f32.mrf.mxu3  ;;  %vm616_vm14 = vcmp.ge.f32.partialorder %v608_v3, 0.0  ;;  %v624_v31 = vmul.f32 0.2, %v608_v3 }
 0x1f4   :  { %v334_v32 = vadd.f32 %v320_v30, %v246_v9 }
 0x1f5   :  { %v632_v33 = vsel %vm616_vm14, %v608_v3, %v624_v31  ;;  %v461_v34 = vpop.f32.mrf.mxu0 }
 0x1f6   :  { %vm342_vm15 = vcmp.ge.f32.partialorder %v334_v32, 0.0  ;;  %v350_v35 = vmul.f32 0.2, %v334_v32  ;;  %640 = vst.msk [vmem:[%s1060_s3 + $0x70] sm:$0xff] %vm362_vm3, %v632_v33  ;;  %v524_v36 = vpop.f32.mrf.mxu1 }
 0x1f7   :  { %v525_v37 = vadd.f32 %v524_v36, %v461_v34  ;;  %v599_v38 = vpop.f32.mrf.mxu2 }
 0x1f8   :  { %v358_v39 = vsel %vm342_vm15, %v334_v32, %v350_v35 }
 0x1f9   :  { %367 = vst.msk [vmem:[%s1060_s3 + $0x20] sm:$0xff] %vm362_vm3, %v358_v39  ;;  %v609_v4 = vadd.f32 %v599_v38, %v525_v37 }
 0x1fb   :  { %v322_v40 = vpop.f32.mrf.mxu3  ;;  %vm617_vm0 = vcmp.ge.f32.partialorder %v609_v4, 0.0  ;;  %v625_v41 = vmul.f32 0.2, %v609_v4 }
 0x1fc   :  { %v335_v42 = vadd.f32 %v322_v40, %v248_v12 }
 0x1fd   :  { %v633_v43 = vsel %vm617_vm0, %v609_v4, %v625_v41 }
 0x1fe   :  { %vm343_vm1 = vcmp.ge.f32.partialorder %v335_v42, 0.0  ;;  %v351_v44 = vmul.f32 0.2, %v335_v42  ;;  %641 = vst.msk [vmem:[%s1060_s3 + $0x78] sm:$0xff] %vm362_vm3, %v633_v43 }
 0x200   :  { %v359_v45 = vsel %vm343_vm1, %v335_v42, %v351_v44 }
 0x201   :  { %368 = vst.msk [vmem:[%s1060_s3 + $0x28] sm:$0xff] %vm362_vm3, %v359_v45 }
 0x203   :  { %v325_v15 = vpop.f32.mrf.mxu3 }
 0x204   :  { %v336_v46 = vadd.f32 %v325_v15, %v251_v6 }
 0x206   :  { %vm344_vm2 = vcmp.ge.f32.partialorder %v336_v46, 0.0  ;;  %v352_v47 = vmul.f32 0.2, %v336_v46 }
 0x208   :  { %v360_v48 = vsel %vm344_vm2, %v336_v46, %v352_v47 }
 0x209   :  { %369 = vst.msk [vmem:[%s1060_s3 + $0x30] sm:$0xff] %vm362_vm3, %v360_v48 }
 0x20b   :  { %v327_v50 = vpop.f32.mrf.mxu3 }
 0x20c   :  { %v337_v51 = vadd.f32 %v327_v50, %v253_v49 }
 0x20e   :  { %vm345_vm4 = vcmp.ge.f32.partialorder %v337_v51, 0.0  ;;  %v353_v52 = vmul.f32 0.2, %v337_v51 }
 0x210   :  { %v361_v53 = vsel %vm345_vm4, %v337_v51, %v353_v52 }
 0x211   :  { %370 = vst.msk [vmem:[%s1060_s3 + $0x38] sm:$0xff] %vm362_vm3, %v361_v53 }

</bundles_post_ra>
